<compile_context>
chip_gen: v7x
topology: tpu7x:2x2x1
jax: 0.10.0
libtpu: 0.0.40
codegen_flags: <defaults>
</compile_context>

<pallas_src>
import functools

import jax
import jax.numpy as jnp
import numpy as np
from jax.experimental import pallas as pl
from jax.experimental.pallas import tpu as pltpu

BN_EPS = 1e-5
LEAKY_SLOPE = 0.1


def _leaky(v):
    # LeakyReLU(0.1): for slope in (0,1), max(v, slope*v) == where(v>0, v, slope*v).
    return jnp.maximum(v, LEAKY_SLOPE * v)


# ----------------------------------------------------------------------------
# Pallas kernel: one full image per grid step, everything in (C, H*W) layout.
# ----------------------------------------------------------------------------
def _bottleneck_csp_kernel(x_ref,
                           a12_ref, b12_ref,         # stacked cv1+cv2 (+BN folds): x -> [t; h2]
                           am1_ref, bm1_ref,          # bottleneck cv1 (+BN), rows stacked over n
                           am2_ref, bm2_ref,          # bottleneck 3x3 (+BN), (c_, 9c_) per block
                           acv3_ref, bcv3_ref,        # cv3 with mid-BN half-1 folded in
                           a4_ref, b4_ref,            # cv4 (+BN) over the 2c_ concat
                           tapmask_ref,               # (9, H*W) border-validity masks, f32
                           out_ref,
                           *, width, n_btl, shortcut):
    f32 = jnp.float32
    bf16 = jnp.bfloat16
    c_ = acv3_ref.shape[0]

    def mm(w, act):
        # bf16 operands on the MXU, f32 accumulation.
        return jnp.dot(w, act.astype(bf16), preferred_element_type=f32)

    x = x_ref[...].astype(f32)                        # (c1, HW)

    # cv1 and cv2 both consume x -> one stacked (2c_, c1) matmul; x dies here.
    th = _leaky(mm(a12_ref[...], x) + b12_ref[...])   # (2c_, HW) f32
    t = th[:c_, :]                                    # running bottleneck state (cv1 branch)
    h2 = th[c_:, :]                                   # cv2(x) branch, consumed at the tail

    taps = [(dy, dx) for dy in (-1, 0, 1) for dx in (-1, 0, 1)]

    for j in range(n_btl):
        am1 = am1_ref[pl.ds(j * c_, c_), :]
        bm1 = bm1_ref[pl.ds(j * c_, c_), :]
        am2 = am2_ref[pl.ds(j * c_, c_), :]           # (c_, 9*c_)
        bm2 = bm2_ref[pl.ds(j * c_, c_), :]

        # Bottleneck.cv1: 1x1 conv + BN + LeakyReLU
        u = _leaky(mm(am1, t) + bm1)                  # (c_, HW) f32

        # Bottleneck.cv2: 3x3 conv (pad=1) + BN + LeakyReLU as ONE fused matmul:
        # build the (9c_, HW) sublane stack of lane-rolled, edge-masked taps,
        # then a single (c_, 9c_) @ (9c_, HW) MXU pass.
        pieces = []
        for k, (dy, dx) in enumerate(taps):
            off = dy * width + dx
            s = u if off == 0 else jnp.roll(u, -off, axis=-1)
            if not (dy == 0 and dx == 0):
                s = s * tapmask_ref[k:k + 1, :]       # zero wrap-around taps
            pieces.append(s.astype(bf16))
        u_stack = jnp.concatenate(pieces, axis=0)     # (9*c_, HW) bf16
        v = _leaky(jnp.dot(am2[...], u_stack, preferred_element_type=f32) + bm2)
        t = t + v if shortcut else v                  # residual add

    # CSP tail: y1 = cv3(t) with mid-BN half folded + LeakyReLU; then cv4 as a
    # single (c2, 2c_) matmul over the real sublane concat [y1; y2].
    h1 = _leaky(mm(acv3_ref[...], t) + bcv3_ref[...])  # (c_, HW)
    h = jnp.concatenate([h1, h2], axis=0)              # (2c_, HW)
    out = _leaky(mm(a4_ref[...], h) + b4_ref[...])
    out_ref[...] = out.astype(out_ref.dtype)


# ----------------------------------------------------------------------------
# Wrapper: NCHW -> (N, C, H*W) via free reshape, grid over batch, back via reshape.
# ----------------------------------------------------------------------------
def bottleneck_csp_pallas(x, fused):
    n_img, c1, height, width = x.shape
    hw = height * width
    (a12, b12, am1, bm1, am2, bm2, acv3, bcv3, a4, b4, n_btl, shortcut) = fused
    c2 = a4.shape[0]

    # TODO(synk): pad W so H*W is a multiple of 128 when it is not.
    x_flat = x.reshape(n_img, c1, hw)                 # free reshape, no transpose

    # Per-tap border-validity masks (tap k = (dy+1)*3 + (dx+1)), merged into one
    # (9, HW) array.  Row-major flattening p = y*W + x; source pixel must stay
    # inside the image for the rolled copy to be valid.
    yy = jnp.repeat(jnp.arange(height), width).reshape(1, hw)
    xx = jnp.tile(jnp.arange(width), height).reshape(1, hw)
    mask_rows = []
    for dy in (-1, 0, 1):
        for dx in (-1, 0, 1):
            m = jnp.ones((1, hw), jnp.float32)
            if dy == -1:
                m = m * (yy >= 1)
            elif dy == 1:
                m = m * (yy <= height - 2)
            if dx == -1:
                m = m * (xx >= 1)
            elif dx == 1:
                m = m * (xx <= width - 2)
            mask_rows.append(m)
    tapmask = jnp.concatenate(mask_rows, axis=0).astype(jnp.float32)   # (9, hw)

    def full(arr):
        nd = arr.ndim
        return pl.BlockSpec(arr.shape, lambda i, _nd=nd: (0,) * _nd)

    kernel = functools.partial(_bottleneck_csp_kernel,
                               width=width, n_btl=n_btl, shortcut=shortcut)

    weights = (a12, b12, am1, bm1, am2, bm2, acv3, bcv3, a4, b4)

    out_flat = pl.pallas_call(
        kernel,
        out_shape=jax.ShapeDtypeStruct((n_img, c2, hw), x.dtype),
        grid=(n_img,),
        in_specs=[pl.BlockSpec((None, c1, hw), lambda i: (i, 0, 0))]
                 + [full(w) for w in weights]
                 + [full(tapmask)],
        out_specs=pl.BlockSpec((None, c2, hw), lambda i: (i, 0, 0)),
        compiler_params=pltpu.CompilerParams(
            dimension_semantics=("parallel",)),
    )(x_flat, *weights, tapmask)

    return out_flat.reshape(n_img, c2, height, width)


# ----------------------------------------------------------------------------
# Deterministic synthetic parameters mirroring BottleneckCSP.__init__.
# ----------------------------------------------------------------------------
def make_raw_params(key, c1, c2, n=1, e=0.5):
    c_ = int(c2 * e)
    it = iter(jax.random.split(key, 7 + 4 * n))

    def conv_w(k, co, ci, kh=1, kw=1):
        w = jax.random.normal(k, (co, ci, kh, kw), jnp.float32) / np.sqrt(ci * kh * kw)
        return w[:, :, 0, 0] if (kh == 1 and kw == 1) else w

    def bn(k, c):
        k1, k2, k3, k4 = jax.random.split(k, 4)
        gamma = 1.0 + 0.1 * jax.random.normal(k1, (c,), jnp.float32)
        beta = 0.1 * jax.random.normal(k2, (c,), jnp.float32)
        mean = 0.1 * jax.random.normal(k3, (c,), jnp.float32)
        var = 1.0 + 0.1 * jax.random.uniform(k4, (c,), jnp.float32)
        return (gamma, beta, mean, var)

    raw = {'cv1_w': conv_w(next(it), c_, c1), 'cv1_bn': bn(next(it), c_), 'm': []}
    for _ in range(n):
        raw['m'].append({
            'cv1_w': conv_w(next(it), c_, c_), 'cv1_bn': bn(next(it), c_),
            'cv2_w': conv_w(next(it), c_, c_, 3, 3), 'cv2_bn': bn(next(it), c_),
        })
    raw['cv2_w'] = conv_w(next(it), c_, c1)
    raw['cv3_w'] = conv_w(next(it), c_, c_)
    raw['bn_mid'] = bn(next(it), 2 * c_)
    raw['cv4_w'] = conv_w(next(it), c2, 2 * c_)
    raw['cv4_bn'] = bn(next(it), c2)
    return raw


def fuse_params(raw, shortcut=True, eps=BN_EPS):
    bf16 = jnp.bfloat16

    def fold(w, bnp):
        gamma, beta, mean, var = bnp
        s = gamma / jnp.sqrt(var + eps)
        a = w * s.reshape((-1,) + (1,) * (w.ndim - 1))
        b = (beta - mean * s).reshape(-1, 1)
        return a, b

    a1, b1 = fold(raw['cv1_w'], raw['cv1_bn'])
    c_ = a1.shape[0]

    am1_l, bm1_l, am2_l, bm2_l = [], [], [], []
    for bp in raw['m']:
        am1, bm1 = fold(bp['cv1_w'], bp['cv1_bn'])
        a3, bm2 = fold(bp['cv2_w'], bp['cv2_bn'])             # (c_, c_, 3, 3)
        # Fused 3x3 weight: columns ordered by tap k = (dy+1)*3 + (dx+1), then
        # input channel, matching the in-kernel (9c_, HW) stack.
        am2 = jnp.transpose(a3, (0, 2, 3, 1)).reshape(c_, 9 * c_)
        am1_l.append(am1); bm1_l.append(bm1)
        am2_l.append(am2); bm2_l.append(bm2)
    am1 = jnp.concatenate(am1_l, axis=0)                      # (n*c_, c_)
    bm1 = jnp.concatenate(bm1_l, axis=0)
    am2 = jnp.concatenate(am2_l, axis=0)                      # (n*c_, 9*c_)
    bm2 = jnp.concatenate(bm2_l, axis=0)

    # Standalone BN over cat([y1, y2]) folded into cv3 / cv2 weights.
    gamma, beta, mean, var = raw['bn_mid']
    s = gamma / jnp.sqrt(var + eps)
    bias = beta - mean * s
    acv3 = raw['cv3_w'] * s[:c_, None]
    bcv3 = bias[:c_].reshape(-1, 1)
    acv2 = raw['cv2_w'] * s[c_:, None]
    bcv2 = bias[c_:].reshape(-1, 1)

    a4, b4 = fold(raw['cv4_w'], raw['cv4_bn'])                # (c2, 2c_)

    # cv1 and cv2 both consume x: stack into one (2c_, c1) matmul.
    a12 = jnp.concatenate([a1, acv2], axis=0)
    b12 = jnp.concatenate([b1, bcv2], axis=0)

    cast = lambda w: w.astype(bf16)                           # bf16 MXU operands
    return (cast(a12), b12, cast(am1), bm1, cast(am2), bm2,
            cast(acv3), bcv3, cast(a4), b4, len(raw['m']), shortcut)


# ----------------------------------------------------------------------------
# Pure-JAX NCHW reference (matches the PyTorch module in eval mode).
# ----------------------------------------------------------------------------
def bottleneck_csp_reference(x, raw, shortcut=True, eps=BN_EPS):
    hp = jax.lax.Precision.HIGHEST

    def bn(v, bnp):
        gamma, beta, mean, var = bnp
        s = gamma / jnp.sqrt(var + eps)
        return v * s[None, :, None, None] + (beta - mean * s)[None, :, None, None]

    def lk(v):
        return jnp.where(v > 0, v, LEAKY_SLOPE * v)

    def conv1x1(v, w):
        return jnp.einsum('oc,nchw->nohw', w, v, precision=hp)

    t = lk(bn(conv1x1(x, raw['cv1_w']), raw['cv1_bn']))
    for bp in raw['m']:
        u = lk(bn(conv1x1(t, bp['cv1_w']), bp['cv1_bn']))
        v = jax.lax.conv_general_dilated(
            u, bp['cv2_w'], window_strides=(1, 1), padding=((1, 1), (1, 1)),
            dimension_numbers=('NCHW', 'OIHW', 'NCHW'), precision=hp)
        v = lk(bn(v, bp['cv2_bn']))
        t = t + v if shortcut else v
    y1 = conv1x1(t, raw['cv3_w'])
    y2 = conv1x1(x, raw['cv2_w'])
    z = lk(bn(jnp.concatenate([y1, y2], axis=1), raw['bn_mid']))
    return lk(bn(conv1x1(z, raw['cv4_w']), raw['cv4_bn']))


if __name__ == "__main__":
    # Small shapes consistent with the module: c_ = 16, H*W = 256 (lane-dense).
    N, C1, C2, H, W = 2, 32, 32, 16, 16
    N_BOTTLENECK = 1          # module default n=1 (shortcut=True, g=1, e=0.5)

    key = jax.random.PRNGKey(0)
    kx, kp = jax.random.split(key)
    x = jax.random.normal(kx, (N, C1, H, W), jnp.float32)

    raw = make_raw_params(kp, C1, C2, n=N_BOTTLENECK)
    fused = fuse_params(raw, shortcut=True)

    out = jax.block_until_ready(bottleneck_csp_pallas(x, fused))
    ref = jax.block_until_ready(bottleneck_csp_reference(x, raw, shortcut=True))

    # Tolerance absorbs bf16 matmul operands (f32 accumulation) across the
    # 5-matmul chain; any real bug (wrong tap / mask / fold) produces O(0.1+).
    np.testing.assert_allclose(np.asarray(out), np.asarray(ref),
                               rtol=6e-2, atol=6e-2)
    print("KERNEL_OK")
</pallas_src>

<mosaic_0001>
module attributes {stable_mosaic.version = 11 : i64} {
  func.func @_bottleneck_csp_kernel(%arg0: i32, %arg1: memref<1x32x256xf32, #tpu.memory_space<vmem>>, %arg2: memref<32x32xbf16, #tpu.memory_space<vmem>>, %arg3: memref<32x1xf32, #tpu.memory_space<vmem>>, %arg4: memref<16x16xbf16, #tpu.memory_space<vmem>>, %arg5: memref<16x1xf32, #tpu.memory_space<vmem>>, %arg6: memref<16x144xbf16, #tpu.memory_space<vmem>>, %arg7: memref<16x1xf32, #tpu.memory_space<vmem>>, %arg8: memref<16x16xbf16, #tpu.memory_space<vmem>>, %arg9: memref<16x1xf32, #tpu.memory_space<vmem>>, %arg10: memref<32x32xbf16, #tpu.memory_space<vmem>>, %arg11: memref<32x1xf32, #tpu.memory_space<vmem>>, %arg12: memref<9x256xf32, #tpu.memory_space<vmem>>, %arg13: memref<1x32x256xf32, #tpu.memory_space<vmem>>) attributes {dimension_semantics = [#tpu.dimension_semantics<parallel>], iteration_bounds = array<i64: 2>, scalar_prefetch = 0 : i64, scratch_operands = 0 : i64, tpu.core_type = #tpu.core_type<tc>, window_params = [{transform_indices = @transform_0, window_bounds = array<i64: 1, 32, 256>}, {pipeline_mode = #tpu.pipeline_mode<synchronous>, transform_indices = @transform_1, window_bounds = array<i64: 32, 32>}, {pipeline_mode = #tpu.pipeline_mode<synchronous>, transform_indices = @transform_2, window_bounds = array<i64: 32, 1>}, {pipeline_mode = #tpu.pipeline_mode<synchronous>, transform_indices = @transform_3, window_bounds = array<i64: 16, 16>}, {pipeline_mode = #tpu.pipeline_mode<synchronous>, transform_indices = @transform_4, window_bounds = array<i64: 16, 1>}, {pipeline_mode = #tpu.pipeline_mode<synchronous>, transform_indices = @transform_5, window_bounds = array<i64: 16, 144>}, {pipeline_mode = #tpu.pipeline_mode<synchronous>, transform_indices = @transform_6, window_bounds = array<i64: 16, 1>}, {pipeline_mode = #tpu.pipeline_mode<synchronous>, transform_indices = @transform_7, window_bounds = array<i64: 16, 16>}, {pipeline_mode = #tpu.pipeline_mode<synchronous>, transform_indices = @transform_8, window_bounds = array<i64: 16, 1>}, {pipeline_mode = #tpu.pipeline_mode<synchronous>, transform_indices = @transform_9, window_bounds = array<i64: 32, 32>}, {pipeline_mode = #tpu.pipeline_mode<synchronous>, transform_indices = @transform_10, window_bounds = array<i64: 32, 1>}, {pipeline_mode = #tpu.pipeline_mode<synchronous>, transform_indices = @transform_11, window_bounds = array<i64: 9, 256>}, {transform_indices = @transform_12, window_bounds = array<i64: 1, 32, 256>}]} {
    %c0 = arith.constant 0 : index
    %c0_0 = arith.constant 0 : index
    %c0_1 = arith.constant 0 : index
    %0 = vector.load %arg1[%c0, %c0_0, %c0_1] : memref<1x32x256xf32, #tpu.memory_space<vmem>>, vector<1x32x256xf32>
    %1 = vector.shape_cast %0 : vector<1x32x256xf32> to vector<32x256xf32>
    %c0_2 = arith.constant 0 : index
    %c0_3 = arith.constant 0 : index
    %2 = vector.load %arg2[%c0_2, %c0_3] : memref<32x32xbf16, #tpu.memory_space<vmem>>, vector<32x32xbf16>
    %3 = arith.truncf %1 : vector<32x256xf32> to vector<32x256xbf16>
    %cst = arith.constant dense<0.000000e+00> : vector<32x256xf32>
    %4 = tpu.matmul %2, %3, %cst {dimension_numbers = #tpu.dot_dimension_numbers<[1], [0], [0], [1], [0, 0, 1, 1], [], []>} : vector<32x32xbf16>, vector<32x256xbf16>, vector<32x256xf32> -> vector<32x256xf32>
    %c0_4 = arith.constant 0 : index
    %c0_5 = arith.constant 0 : index
    %5 = vector.load %arg3[%c0_4, %c0_5] : memref<32x1xf32, #tpu.memory_space<vmem>>, vector<32x1xf32>
    %6 = vector.broadcast %5 : vector<32x1xf32> to vector<32x256xf32>
    %7 = arith.addf %4, %6 : vector<32x256xf32>
    %cst_6 = arith.constant 1.000000e-01 : f32
    %8 = vector.broadcast %cst_6 : f32 to vector<32x256xf32>
    %9 = arith.mulf %8, %7 : vector<32x256xf32>
    %10 = arith.maximumf %7, %9 : vector<32x256xf32>
    %11 = vector.extract_strided_slice %10 {offsets = [0, 0], sizes = [16, 256], strides = [1, 1]} : vector<32x256xf32> to vector<16x256xf32>
    %12 = vector.extract_strided_slice %10 {offsets = [16, 0], sizes = [16, 256], strides = [1, 1]} : vector<32x256xf32> to vector<16x256xf32>
    %c0_7 = arith.constant 0 : index
    %c0_8 = arith.constant 0 : index
    %13 = vector.load %arg4[%c0_7, %c0_8] : memref<16x16xbf16, #tpu.memory_space<vmem>>, vector<16x16xbf16>
    %c0_9 = arith.constant 0 : index
    %c0_10 = arith.constant 0 : index
    %14 = vector.load %arg5[%c0_9, %c0_10] : memref<16x1xf32, #tpu.memory_space<vmem>>, vector<16x1xf32>
    %c0_11 = arith.constant 0 : index
    %c0_12 = arith.constant 0 : index
    %15 = vector.load %arg6[%c0_11, %c0_12] : memref<16x144xbf16, #tpu.memory_space<vmem>>, vector<16x144xbf16>
    %c0_13 = arith.constant 0 : index
    %c0_14 = arith.constant 0 : index
    %16 = vector.load %arg7[%c0_13, %c0_14] : memref<16x1xf32, #tpu.memory_space<vmem>>, vector<16x1xf32>
    %17 = arith.truncf %11 : vector<16x256xf32> to vector<16x256xbf16>
    %cst_15 = arith.constant dense<0.000000e+00> : vector<16x256xf32>
    %18 = tpu.matmul %13, %17, %cst_15 {dimension_numbers = #tpu.dot_dimension_numbers<[1], [0], [0], [1], [0, 0, 1, 1], [], []>} : vector<16x16xbf16>, vector<16x256xbf16>, vector<16x256xf32> -> vector<16x256xf32>
    %19 = vector.broadcast %14 : vector<16x1xf32> to vector<16x256xf32>
    %20 = arith.addf %18, %19 : vector<16x256xf32>
    %cst_16 = arith.constant 1.000000e-01 : f32
    %21 = vector.broadcast %cst_16 : f32 to vector<16x256xf32>
    %22 = arith.mulf %21, %20 : vector<16x256xf32>
    %23 = arith.maximumf %20, %22 : vector<16x256xf32>
    %24 = vector.extract_strided_slice %23 {offsets = [0, 239], sizes = [16, 17], strides = [1, 1]} : vector<16x256xf32> to vector<16x17xf32>
    %25 = vector.extract_strided_slice %23 {offsets = [0, 0], sizes = [16, 239], strides = [1, 1]} : vector<16x256xf32> to vector<16x239xf32>
    %26 = tpu.concatenate %24, %25 in 1 : vector<16x17xf32>, vector<16x239xf32> -> vector<16x256xf32>
    %c0_17 = arith.constant 0 : index
    %c0_18 = arith.constant 0 : index
    %27 = vector.load %arg12[%c0_17, %c0_18] : memref<9x256xf32, #tpu.memory_space<vmem>>, vector<1x256xf32>
    %28 = vector.broadcast %27 : vector<1x256xf32> to vector<16x256xf32>
    %29 = arith.mulf %26, %28 : vector<16x256xf32>
    %30 = arith.truncf %29 : vector<16x256xf32> to vector<16x256xbf16>
    %31 = vector.extract_strided_slice %23 {offsets = [0, 240], sizes = [16, 16], strides = [1, 1]} : vector<16x256xf32> to vector<16x16xf32>
    %32 = vector.extract_strided_slice %23 {offsets = [0, 0], sizes = [16, 240], strides = [1, 1]} : vector<16x256xf32> to vector<16x240xf32>
    %33 = tpu.concatenate %31, %32 in 1 : vector<16x16xf32>, vector<16x240xf32> -> vector<16x256xf32>
    %c1 = arith.constant 1 : index
    %c0_19 = arith.constant 0 : index
    %34 = vector.load %arg12[%c1, %c0_19] : memref<9x256xf32, #tpu.memory_space<vmem>>, vector<1x256xf32>
    %35 = vector.broadcast %34 : vector<1x256xf32> to vector<16x256xf32>
    %36 = arith.mulf %33, %35 : vector<16x256xf32>
    %37 = arith.truncf %36 : vector<16x256xf32> to vector<16x256xbf16>
    %38 = vector.extract_strided_slice %23 {offsets = [0, 241], sizes = [16, 15], strides = [1, 1]} : vector<16x256xf32> to vector<16x15xf32>
    %39 = vector.extract_strided_slice %23 {offsets = [0, 0], sizes = [16, 241], strides = [1, 1]} : vector<16x256xf32> to vector<16x241xf32>
    %40 = tpu.concatenate %38, %39 in 1 : vector<16x15xf32>, vector<16x241xf32> -> vector<16x256xf32>
    %c2 = arith.constant 2 : index
    %c0_20 = arith.constant 0 : index
    %41 = vector.load %arg12[%c2, %c0_20] : memref<9x256xf32, #tpu.memory_space<vmem>>, vector<1x256xf32>
    %42 = vector.broadcast %41 : vector<1x256xf32> to vector<16x256xf32>
    %43 = arith.mulf %40, %42 : vector<16x256xf32>
    %44 = arith.truncf %43 : vector<16x256xf32> to vector<16x256xbf16>
    %45 = vector.extract_strided_slice %23 {offsets = [0, 255], sizes = [16, 1], strides = [1, 1]} : vector<16x256xf32> to vector<16x1xf32>
    %46 = vector.extract_strided_slice %23 {offsets = [0, 0], sizes = [16, 255], strides = [1, 1]} : vector<16x256xf32> to vector<16x255xf32>
    %47 = tpu.concatenate %45, %46 in 1 : vector<16x1xf32>, vector<16x255xf32> -> vector<16x256xf32>
    %c3 = arith.constant 3 : index
    %c0_21 = arith.constant 0 : index
    %48 = vector.load %arg12[%c3, %c0_21] : memref<9x256xf32, #tpu.memory_space<vmem>>, vector<1x256xf32>
    %49 = vector.broadcast %48 : vector<1x256xf32> to vector<16x256xf32>
    %50 = arith.mulf %47, %49 : vector<16x256xf32>
    %51 = arith.truncf %50 : vector<16x256xf32> to vector<16x256xbf16>
    %52 = arith.truncf %23 : vector<16x256xf32> to vector<16x256xbf16>
    %53 = vector.extract_strided_slice %23 {offsets = [0, 1], sizes = [16, 255], strides = [1, 1]} : vector<16x256xf32> to vector<16x255xf32>
    %54 = vector.extract_strided_slice %23 {offsets = [0, 0], sizes = [16, 1], strides = [1, 1]} : vector<16x256xf32> to vector<16x1xf32>
    %55 = tpu.concatenate %53, %54 in 1 : vector<16x255xf32>, vector<16x1xf32> -> vector<16x256xf32>
    %c5 = arith.constant 5 : index
    %c0_22 = arith.constant 0 : index
    %56 = vector.load %arg12[%c5, %c0_22] : memref<9x256xf32, #tpu.memory_space<vmem>>, vector<1x256xf32>
    %57 = vector.broadcast %56 : vector<1x256xf32> to vector<16x256xf32>
    %58 = arith.mulf %55, %57 : vector<16x256xf32>
    %59 = arith.truncf %58 : vector<16x256xf32> to vector<16x256xbf16>
    %60 = vector.extract_strided_slice %23 {offsets = [0, 15], sizes = [16, 241], strides = [1, 1]} : vector<16x256xf32> to vector<16x241xf32>
    %61 = vector.extract_strided_slice %23 {offsets = [0, 0], sizes = [16, 15], strides = [1, 1]} : vector<16x256xf32> to vector<16x15xf32>
    %62 = tpu.concatenate %60, %61 in 1 : vector<16x241xf32>, vector<16x15xf32> -> vector<16x256xf32>
    %c6 = arith.constant 6 : index
    %c0_23 = arith.constant 0 : index
    %63 = vector.load %arg12[%c6, %c0_23] : memref<9x256xf32, #tpu.memory_space<vmem>>, vector<1x256xf32>
    %64 = vector.broadcast %63 : vector<1x256xf32> to vector<16x256xf32>
    %65 = arith.mulf %62, %64 : vector<16x256xf32>
    %66 = arith.truncf %65 : vector<16x256xf32> to vector<16x256xbf16>
    %67 = vector.extract_strided_slice %23 {offsets = [0, 16], sizes = [16, 240], strides = [1, 1]} : vector<16x256xf32> to vector<16x240xf32>
    %68 = vector.extract_strided_slice %23 {offsets = [0, 0], sizes = [16, 16], strides = [1, 1]} : vector<16x256xf32> to vector<16x16xf32>
    %69 = tpu.concatenate %67, %68 in 1 : vector<16x240xf32>, vector<16x16xf32> -> vector<16x256xf32>
    %c7 = arith.constant 7 : index
    %c0_24 = arith.constant 0 : index
    %70 = vector.load %arg12[%c7, %c0_24] : memref<9x256xf32, #tpu.memory_space<vmem>>, vector<1x256xf32>
    %71 = vector.broadcast %70 : vector<1x256xf32> to vector<16x256xf32>
    %72 = arith.mulf %69, %71 : vector<16x256xf32>
    %73 = arith.truncf %72 : vector<16x256xf32> to vector<16x256xbf16>
    %74 = vector.extract_strided_slice %23 {offsets = [0, 17], sizes = [16, 239], strides = [1, 1]} : vector<16x256xf32> to vector<16x239xf32>
    %75 = vector.extract_strided_slice %23 {offsets = [0, 0], sizes = [16, 17], strides = [1, 1]} : vector<16x256xf32> to vector<16x17xf32>
    %76 = tpu.concatenate %74, %75 in 1 : vector<16x239xf32>, vector<16x17xf32> -> vector<16x256xf32>
    %c8 = arith.constant 8 : index
    %c0_25 = arith.constant 0 : index
    %77 = vector.load %arg12[%c8, %c0_25] : memref<9x256xf32, #tpu.memory_space<vmem>>, vector<1x256xf32>
    %78 = vector.broadcast %77 : vector<1x256xf32> to vector<16x256xf32>
    %79 = arith.mulf %76, %78 : vector<16x256xf32>
    %80 = arith.truncf %79 : vector<16x256xf32> to vector<16x256xbf16>
    %81 = tpu.concatenate %30, %37, %44, %51, %52, %59, %66, %73, %80 in 0 : vector<16x256xbf16>, vector<16x256xbf16>, vector<16x256xbf16>, vector<16x256xbf16>, vector<16x256xbf16>, vector<16x256xbf16>, vector<16x256xbf16>, vector<16x256xbf16>, vector<16x256xbf16> -> vector<144x256xbf16>
    %cst_26 = arith.constant dense<0.000000e+00> : vector<16x256xf32>
    %82 = tpu.matmul %15, %81, %cst_26 {dimension_numbers = #tpu.dot_dimension_numbers<[1], [0], [0], [1], [0, 0, 1, 1], [], []>} : vector<16x144xbf16>, vector<144x256xbf16>, vector<16x256xf32> -> vector<16x256xf32>
    %83 = vector.broadcast %16 : vector<16x1xf32> to vector<16x256xf32>
    %84 = arith.addf %82, %83 : vector<16x256xf32>
    %cst_27 = arith.constant 1.000000e-01 : f32
    %85 = vector.broadcast %cst_27 : f32 to vector<16x256xf32>
    %86 = arith.mulf %85, %84 : vector<16x256xf32>
    %87 = arith.maximumf %84, %86 : vector<16x256xf32>
    %88 = arith.addf %11, %87 : vector<16x256xf32>
    %c0_28 = arith.constant 0 : index
    %c0_29 = arith.constant 0 : index
    %89 = vector.load %arg8[%c0_28, %c0_29] : memref<16x16xbf16, #tpu.memory_space<vmem>>, vector<16x16xbf16>
    %90 = arith.truncf %88 : vector<16x256xf32> to vector<16x256xbf16>
    %cst_30 = arith.constant dense<0.000000e+00> : vector<16x256xf32>
    %91 = tpu.matmul %89, %90, %cst_30 {dimension_numbers = #tpu.dot_dimension_numbers<[1], [0], [0], [1], [0, 0, 1, 1], [], []>} : vector<16x16xbf16>, vector<16x256xbf16>, vector<16x256xf32> -> vector<16x256xf32>
    %c0_31 = arith.constant 0 : index
    %c0_32 = arith.constant 0 : index
    %92 = vector.load %arg9[%c0_31, %c0_32] : memref<16x1xf32, #tpu.memory_space<vmem>>, vector<16x1xf32>
    %93 = vector.broadcast %92 : vector<16x1xf32> to vector<16x256xf32>
    %94 = arith.addf %91, %93 : vector<16x256xf32>
    %cst_33 = arith.constant 1.000000e-01 : f32
    %95 = vector.broadcast %cst_33 : f32 to vector<16x256xf32>
    %96 = arith.mulf %95, %94 : vector<16x256xf32>
    %97 = arith.maximumf %94, %96 : vector<16x256xf32>
    %98 = tpu.concatenate %97, %12 in 0 : vector<16x256xf32>, vector<16x256xf32> -> vector<32x256xf32>
    %c0_34 = arith.constant 0 : index
    %c0_35 = arith.constant 0 : index
    %99 = vector.load %arg10[%c0_34, %c0_35] : memref<32x32xbf16, #tpu.memory_space<vmem>>, vector<32x32xbf16>
    %100 = arith.truncf %98 : vector<32x256xf32> to vector<32x256xbf16>
    %cst_36 = arith.constant dense<0.000000e+00> : vector<32x256xf32>
    %101 = tpu.matmul %99, %100, %cst_36 {dimension_numbers = #tpu.dot_dimension_numbers<[1], [0], [0], [1], [0, 0, 1, 1], [], []>} : vector<32x32xbf16>, vector<32x256xbf16>, vector<32x256xf32> -> vector<32x256xf32>
    %c0_37 = arith.constant 0 : index
    %c0_38 = arith.constant 0 : index
    %102 = vector.load %arg11[%c0_37, %c0_38] : memref<32x1xf32, #tpu.memory_space<vmem>>, vector<32x1xf32>
    %103 = vector.broadcast %102 : vector<32x1xf32> to vector<32x256xf32>
    %104 = arith.addf %101, %103 : vector<32x256xf32>
    %cst_39 = arith.constant 1.000000e-01 : f32
    %105 = vector.broadcast %cst_39 : f32 to vector<32x256xf32>
    %106 = arith.mulf %105, %104 : vector<32x256xf32>
    %107 = arith.maximumf %104, %106 : vector<32x256xf32>
    %c0_40 = arith.constant 0 : index
    %c0_41 = arith.constant 0 : index
    %c0_42 = arith.constant 0 : index
    %108 = vector.load %arg13[%c0_40, %c0_41, %c0_42] : memref<1x32x256xf32, #tpu.memory_space<vmem>>, vector<1x32x256xf32>
    %109 = vector.shape_cast %108 : vector<1x32x256xf32> to vector<32x256xf32>
    %110 = vector.shape_cast %107 : vector<32x256xf32> to vector<1x32x256xf32>
    tpu.vector_store %arg13[%c0_40, %c0_41, %c0_42], %110 {strides = array<i32>} : memref<1x32x256xf32, #tpu.memory_space<vmem>>, vector<1x32x256xf32>,
    return
  }
  func.func @transform_0(%arg0: i32) -> (i32, i32, i32) {
    %c0_i32 = arith.constant 0 : i32
    %c0_i32_0 = arith.constant 0 : i32
    %c0_i32_1 = arith.constant 0 : i32
    return %arg0, %c0_i32, %c0_i32_0 : i32, i32, i32
  }
  func.func @transform_1(%arg0: i32) -> (i32, i32) {
    %c0_i32 = arith.constant 0 : i32
    %c0_i32_0 = arith.constant 0 : i32
    %c0_i32_1 = arith.constant 0 : i32
    return %c0_i32, %c0_i32_0 : i32, i32
  }
  func.func @transform_2(%arg0: i32) -> (i32, i32) {
    %c0_i32 = arith.constant 0 : i32
    %c0_i32_0 = arith.constant 0 : i32
    %c0_i32_1 = arith.constant 0 : i32
    return %c0_i32, %c0_i32_0 : i32, i32
  }
  func.func @transform_3(%arg0: i32) -> (i32, i32) {
    %c0_i32 = arith.constant 0 : i32
    %c0_i32_0 = arith.constant 0 : i32
    %c0_i32_1 = arith.constant 0 : i32
    return %c0_i32, %c0_i32_0 : i32, i32
  }
  func.func @transform_4(%arg0: i32) -> (i32, i32) {
    %c0_i32 = arith.constant 0 : i32
    %c0_i32_0 = arith.constant 0 : i32
    %c0_i32_1 = arith.constant 0 : i32
    return %c0_i32, %c0_i32_0 : i32, i32
  }
  func.func @transform_5(%arg0: i32) -> (i32, i32) {
    %c0_i32 = arith.constant 0 : i32
    %c0_i32_0 = arith.constant 0 : i32
    %c0_i32_1 = arith.constant 0 : i32
    return %c0_i32, %c0_i32_0 : i32, i32
  }
  func.func @transform_6(%arg0: i32) -> (i32, i32) {
    %c0_i32 = arith.constant 0 : i32
    %c0_i32_0 = arith.constant 0 : i32
    %c0_i32_1 = arith.constant 0 : i32
    return %c0_i32, %c0_i32_0 : i32, i32
  }
  func.func @transform_7(%arg0: i32) -> (i32, i32) {
    %c0_i32 = arith.constant 0 : i32
    %c0_i32_0 = arith.constant 0 : i32
    %c0_i32_1 = arith.constant 0 : i32
    return %c0_i32, %c0_i32_0 : i32, i32
  }
  func.func @transform_8(%arg0: i32) -> (i32, i32) {
    %c0_i32 = arith.constant 0 : i32
    %c0_i32_0 = arith.constant 0 : i32
    %c0_i32_1 = arith.constant 0 : i32
    return %c0_i32, %c0_i32_0 : i32, i32
  }
  func.func @transform_9(%arg0: i32) -> (i32, i32) {
    %c0_i32 = arith.constant 0 : i32
    %c0_i32_0 = arith.constant 0 : i32
    %c0_i32_1 = arith.constant 0 : i32
    return %c0_i32, %c0_i32_0 : i32, i32
  }
  func.func @transform_10(%arg0: i32) -> (i32, i32) {
    %c0_i32 = arith.constant 0 : i32
    %c0_i32_0 = arith.constant 0 : i32
    %c0_i32_1 = arith.constant 0 : i32
    return %c0_i32, %c0_i32_0 : i32, i32
  }
  func.func @transform_11(%arg0: i32) -> (i32, i32) {
    %c0_i32 = arith.constant 0 : i32
    %c0_i32_0 = arith.constant 0 : i32
    %c0_i32_1 = arith.constant 0 : i32
    return %c0_i32, %c0_i32_0 : i32, i32
  }
  func.func @transform_12(%arg0: i32) -> (i32, i32, i32) {
    %c0_i32 = arith.constant 0 : i32
    %c0_i32_0 = arith.constant 0 : i32
    %c0_i32_1 = arith.constant 0 : i32
    return %arg0, %c0_i32, %c0_i32_0 : i32, i32, i32
  }
}

</mosaic_0001>

<bundles_post_ra>
// kernel: tpu_custom_call.1
= control target key start
LH: loop header
LB: loop body
LE: loop exit
PB: predicated region body
PF: predicated region fallthrough
CT: control target
= control target key end

     0   :  { %17 = vsyncpa [#allocation3], 0  ;;  %s2044_s0 = inlined_call_operand.hbm [shape: f32[2,32,256], index: 0, kind: input, shape index: {}]   ;;  %s2045_s1 = inlined_call_operand.vmem [shape: bf16[32,32], index: 1, kind: input, shape index: {}]   ;;  %s2046_s2 = inlined_call_operand.vmem [shape: f32[32,1], index: 2, kind: input, shape index: {}]   ;;  %s2047_s3 = inlined_call_operand.vmem [shape: bf16[16,16], index: 3, kind: input, shape index: {}]   ;;  %s2048_s4 = inlined_call_operand.vmem [shape: f32[16,1], index: 4, kind: input, shape index: {}]   ;;  %s2049_s5 = inlined_call_operand.vmem [shape: bf16[16,144], index: 5, kind: input, shape index: {}]   ;;  %s2050_s6 = inlined_call_operand.vmem [shape: f32[16,1], index: 6, kind: input, shape index: {}]   ;;  %s2051_s7 = inlined_call_operand.vmem [shape: bf16[16,16], index: 7, kind: input, shape index: {}]   ;;  %s2052_s8 = inlined_call_operand.vmem [shape: f32[16,1], index: 8, kind: input, shape index: {}]   ;;  %s2053_s9 = inlined_call_operand.vmem [shape: bf16[32,32], index: 9, kind: input, shape index: {}]   ;;  %s2054_s10 = inlined_call_operand.vmem [shape: f32[32,1], index: 10, kind: input, shape index: {}]   ;;  %s2055_s11 = inlined_call_operand.vmem [shape: f32[9,256], index: 11, kind: input, shape index: {}]   ;;  %s2056_s12 = inlined_call_operand.hbm [shape: f32[2,32,256], index: 12, kind: output, shape index: {}]  }
   0x1   :  { %19 = vsyncpa [#allocation3 + $0x1], 0 }
   0x2   :  { %20 = vsyncpa [#allocation4], 0 }
   0x3   :  { %22 = vsyncpa [#allocation4 + $0x1], 0  ;;  %s1595_s21 = smov 0   ;;  %s1597_s22 = smov 0  }
   0x4   :  { %s1599_s23 = smov 0   ;;  %s1601_s24 = smov 0  }
   0x5 LB: > { %2061 = sst [smem:[#allocation8_spill]] %s1510_s23  ;;  %s1616_s25 = sadd.s32 4294967295, %s1514_s24   ;;  %s1514_s24 = sphi %s1601_s24, %s2072_s24   ;;  %s1510_s23 = sphi %s1599_s23, %s2074_s23   ;;  %s1506_s22 = sphi %s1597_s22, %s2076_s22   ;;  %s1502_s21 = sphi %s1595_s21, %s2075_s21  }
   0x6   : > { %s1311_s26 = sadd.s32 4294967294, %s1514_s24   ;;  %s1620_s27 = sadd.s32 1, %s1514_s24  }
   0x7   : > { %2062 = sst [smem:[#allocation9_spill]] %s1620_s27  ;;  %s35_s28 = sadd.s32 1, %s1510_s23 }
   0x8   : > { %s32_s29 = ssub.s32 %s1514_s24, %s1620_s27  ;;  %p42_p0 = scmp.ne.s32.totalorder %s1510_s23, %s1506_s22 }
   0x9   : > { %p33_p1 = scmp.eq.s32.totalorder %s32_s29, 0  ;;  %p43_p2 = scmp.eq.s32.totalorder %s1514_s24, 0 }
   0xa   : > { %p48_p3 = scmp.ne.s32.totalorder %s1506_s22, %s1502_s21  ;;  %p49_p4 = scmp.eq.s32.totalorder %s1616_s25, 0 }
   0xb   : > { %s1632_s30 = scalar_select %p33_p1, %s1510_s23, %s35_s28  }
   0xc   : > { %p1634_p5 = por %p43_p2, %p42_p0  ;;  %p1638_p6 = por %p49_p4, %p48_p3 }
   0xd   : > { %2063 = sst [smem:[#allocation10_spill]] %s1632_s30  ;;  %p303_p7 = scmp.eq.s32.totalorder %s1616_s25, 1 }
   0xe   : > { %p309_p8 = scmp.eq.s32.totalorder %s1311_s26, 1  ;;  %p1361_p10 = scmp.lt.s32.totalorder %s1514_s24, 2 }
   0xf   : > { %p1645_p11 = por %p303_p7, %p42_p0  ;;  %s362_s17 = sand.u32 1, %s1510_s23  }
  0x10   : > { %p1649_p12 = por %p309_p8, %p48_p3  ;;  %s1347_s18 = sshll.u32 %s1514_s24, 10 }
  0x11   : > { %s2066_s15 = scalar_select %p1645_p11, 1, 0 }
  0x12   : > { %s2067_s16 = scalar_select %p1649_p12, 1, 0 }
  0x13   : > { %s1314_s19 = sshll.u32 %s362_s17, 6  ;;  %s1658_s29 = scalar_lea.hbm %s2044_s0, %s1347_s18 }
  0x14   : > { %s366_s26 = scalar_lea.vmem [#allocation2], %s1314_s19  ;;  %p1662_p13 = pnand %p1361_p10, %p1634_p5 }
  0x15   : > { %s373_s30 = sshll.u32 %s366_s26, 4  ;;  %s1668_s23 = scalar_lea.sflag [#allocation3], %s362_s17  ;;  %s1666_s30 = int_to_ptr.vmem [resolvable:$true] %s373_s30 }
  0x16   : > { %s1418_s20 = scalar_lea.hbm %s1658_s29, 1024  ;;  %p1420_p1 = pneg %p1662_p13 }
  0x17   : > { %p1419_p0 = scmp.ne.s32.totalorder %s1658_s29, %s1418_s20  ;;  %s1423_s19 = scalar_lea.hbm %s2044_s0, 2048 }
  0x18   : > { %p1424_p4 = scmp.lt.u32.totalorder %s1658_s29, %s2044_s0  ;;  %p1425_p5 = scmp.lt.u32.totalorder %s1423_s19, %s1418_s20 }
  0x19   : > { %p1421_p2 = pnand %p1420_p1, %p1419_p0  ;;  %p1427_p8 = scmp.lt.u32.totalorder %s1418_s20, %s1658_s29 }
  0x1a   : > { %p1426_p7 = por %p1425_p5, %p1424_p4 }
  0x1b   : > { %p1422_p3 = pneg %p1421_p2 }
  0x1c   : > { %p1428_p10 = por %p1427_p8, %p1426_p7 }
  0x1e   : > { %p1429_p9 = pnand %p1428_p10, %p1422_p3 }
  0x20   : > { %1432 = shalt.err (!%p1429_p9)
}
  0x21   : > { %s1433_s17 = scalar_lea.vmem %s1666_s30, 1024  ;;  %s1516_s18 = smov [#allocation2]  }
  0x22   : > { %p1434_p0 = scmp.ne.s32.totalorder %s1666_s30, %s1433_s17  ;;  %s1438_s13 = sshll.u32 %s1516_s18, 4  ;;  %s1439_s13 = int_to_ptr.vmem [resolvable:$false] %s1438_s13 }
  0x23   : > { %s1440_s28 = scalar_lea.vmem %s1439_s13, 2048  ;;  %p1441_p11 = scmp.lt.s32.totalorder %s1666_s30, %s1439_s13 }
  0x24   : > { %p1436_p2 = pnand %p1434_p0, %p1420_p1  ;;  %p1442_p4 = scmp.lt.s32.totalorder %s1440_s28, %s1433_s17 }
  0x26   : > { %p1437_p12 = pneg %p1436_p2  ;;  %p1443_p5 = por %p1442_p4, %p1441_p11 }
  0x28   : > { %p1444_p7 = pnand %p1443_p5, %p1437_p12 }
  0x2a   : > { %1447 = shalt.err (!%p1444_p7)
}
  0x2b   : > { %s1517_s20 = smov 256   ;;  %s1518_s19 = smov 16  }
  0x2c   : > { %1356 = dma.hbm_to_vmem [thread:$0]  (!%p1662_p13), %s1658_s29, 1024, %s1666_s30, %s1668_s23, %s1517_s20, %s1517_s20, %s1518_s19  }
  0x2d   : > { %p1317_p9 = scmp.ge.s32.totalorder %s1514_s24, 1  ;;  %p381_p1 = scmp.lt.s32.totalorder %s1514_s24, 3 }
  0x2f   : > { %p382_p3 = pnand %p1317_p9, %p381_p1 }
  0x30   : > { %s1699_s26 = sand.u32 (!%p382_p3), 1, %s1506_s22  }
  0x31   : > { %385 = sbr.rel (%p382_p3) target bundleno = 1402 (0x57a), region = 68  ;;  %s1318_s17 = sshll.u32 (!%p382_p3), %s1699_s26, 6 }
  0x32   : > { %s388_s18 = scalar_lea.sflag (!%p382_p3), [#allocation3], %s1699_s26  ;;  %s391_s13 = scalar_lea.vmem (!%p382_p3), [#allocation2], %s1318_s17 }
  0x38   : > { %1493 = dma.done.wait (%p1638_p6), %s388_s18, 1024  }
  0x39   : > { %1495 = vsyncadd (%p1638_p6), %s388_s18, 4294966272  ;;  %v1519_v0 = vmov 0   ;;  %v434_v1 = vld [vmem:[%s391_s13 + $0x8] sm:$0xff]  ;;  %v436_v2 = vld [vmem:[%s391_s13 + $0x18] sm:$0xff]  ;;  %vm483_vm0 = vcmask 261120   ;;  %vm584_vm1 = vcmask 130048  }
  0x3a   : > { %522 = vmatprep.mubr.bf16.mxu0 %v1519_v0  ;;  %1407 = vset.pattern.permute.xlu0 %v1519_v0  ;;  %v433_v3 = vld [vmem:[%s391_s13] sm:$0xff]  ;;  %v446_v4 = vpack.c.bf16 %v436_v2, %v434_v1  ;;  %v435_v5 = vld [vmem:[%s391_s13 + $0x10] sm:$0xff]  ;;  %v438_v6 = vld [vmem:[%s391_s13 + $0x28] sm:$0xff]  ;;  %s1520_s29 = smov 17   ;;  %s1521_s28 = smov 127   ;;  %vm653_vm2 = vcmask 138240  }
  0x3b   : > { %620 = vmatprep.mubr.bf16.mxu1 %v1519_v0  ;;  %1408 = vset.pattern.permute.xlu1 %v1519_v0  ;;  %v440_v7 = vld [vmem:[%s391_s13 + $0x38] sm:$0xff]  ;;  %v445_v8 = vpack.c.bf16 %v435_v5, %v433_v3  ;;  %v437_v10 = vld [vmem:[%s391_s13 + $0x20] sm:$0xff]  ;;  %v439_v11 = vld [vmem:[%s391_s13 + $0x30] sm:$0xff]  ;;  %s1522_s20 = smov 16   ;;  %s1523_s19 = smov 113   ;;  %vm727_vm3 = vcmask 121856  }
  0x3c   : > { %v448_v9 = vpack.c.bf16 %v440_v7, %v438_v6  ;;  %490 = vmatprep.subr.bf16.mxu0 %v446_v4  ;;  %v449_v12 = vld [vmem:[%s2046_s2] sm:$0xff]  ;;  %v447_v13 = vpack.c.bf16 %v439_v11, %v437_v10  ;;  %v450_v14 = vld [vmem:[%s2046_s2 + $0x8] sm:$0xff]  ;;  %s1524_s18 = smov 15   ;;  %s1525_s13 = smov 112   ;;  %v451_v3 = vld [vmem:[%s2046_s2 + $0x10] sm:$0xff]  ;;  %vm765_vm4 = vcmask 7168  }
  0x3d   : > { %491 = vmatpush1.bf16.msra.mxu0 %v445_v8  ;;  %455 = vperm.xlu0 %1407, %v449_v12   ;;  %v1409_v15 = vld [vmem:[%s2045_s1] sm:$0xff]   ;;  %v1411_v17 = vld [vmem:[%s2045_s1 + $0x8] sm:$0xff]   ;;  %s1526_s23 = smov 1   ;;  %s1527_s27 = smov 111   ;;  %v452_v5 = vld [vmem:[%s2046_s2 + $0x18] sm:$0xff]  ;;  %vm803_vm5 = vcmask 1039360  }
  0x3e   : > { %492 = vmatprep.subr.bf16.mxu0 %v448_v9  ;;  %v561_v16 = vld [vmem:[%s2048_s4] sm:$0xff]  ;;  %v562_v18 = vld [vmem:[%s2048_s4 + $0x8] sm:$0xff]  ;;  %v1109_v10 = vld [vmem:[%s2054_s10 + $0x10] sm:$0xff]  ;;  %vm841_vm6 = vcmask 924672   ;;  %vm879_vm7 = vcmask 916480   ;;  %vm917_vm8 = vcmask 908288  }
  0x3f   : > { %571 = vperm.xlu1 %1408, %v561_v16   ;;  %v1410_v39 = vld [vmem:[%s2047_s3] sm:$0xff]   ;;  %v566_v62 = vld [vmem:[%s2050_s6 + $0x8] sm:$0xff]  ;;  %v1110_v11 = vld [vmem:[%s2054_s10 + $0x18] sm:$0xff]  ;;  %p2069_p11 = scmp.ne.s32.totalorder %s2066_s15, 0  ;;  %s1528_s30 = smov [#allocation5]  }
  0x40   : > { %v1412_v60 = vld [vmem:[%s2049_s5 + $0x4] ss:$8 sps:$4 sm:$0xff]   ;;  %s1452_s14 = sshll.u32 %s1528_s30, 4  ;;  %s1453_s14 = int_to_ptr.vmem [resolvable:$false] %s1452_s14 }
  0x41   : > { %493 = vmatpush1.bf16.msra.mxu0 %v447_v13  ;;  %460 = vperm.xlu0 %1407, %v450_v14   ;;  %v565_v61 = vld [vmem:[%s2050_s6] sm:$0xff]  ;;  %v1029_v1 = vld [vmem:[%s2052_s8 + $0x8] sm:$0xff] }
  0x42   : > { %v1028_v63 = vld [vmem:[%s2052_s8] sm:$0xff]  ;;  %v1108_v9 = vld [vmem:[%s2054_s10 + $0x8] sm:$0xff] }
  0x43   : > { %576 = vperm.xlu1 %1408, %v562_v18   ;;  %v1107_v8 = vld [vmem:[%s2054_s10] sm:$0xff] }
  0x44   : > { %1322 = vmatmul.mubr.msk.bf16.vlgmr.msra.gmra.mrb[0].mxu0 %vm483_vm0, %v1409_v15 }
  0x45   : > { %532 = vmatprep.mubr.bf16.mxu0 %v1519_v0 }
  0x4c   : > { %1323 = vmatmul.mubr.msk.bf16.gmra.mrb[4].mxu0 %vm483_vm0, %v1411_v17 }
  0x4d   : > { %1080 = vmatprep.mubr.bf16.mxu0 %v1519_v0 }
  0xbc   : > { %v456_v19 = vpop.permute.xlu0 %455 }
  0xbe   : > { %v572_v40 = vpop.permute.xlu1 %571 }
  0xc0   : > { %v461_v23 = vpop.permute.xlu0 %460 }
  0xc2   : > { %v577_v42 = vpop.permute.xlu1 %576 }
 0x117   : > { %v524_v20 = vpop.f32.mrb[0].mxu0 }
 0x118   : > { %v525_v21 = vadd.f32 %v524_v20, %v456_v19  ;;  %v526_v22 = vpop.f32.mrb[1].mxu0  ;;  %v664_v20 = vlaneseq }
 0x119   : > { %v527_v24 = vadd.f32 %v526_v22, %v456_v19  ;;  %v528_v25 = vpop.f32.mrb[2].mxu0 }
 0x11a   : > { %v529_v26 = vadd.f32 %v528_v25, %v461_v23  ;;  %v530_v27 = vpop.f32.mrb[3].mxu0  ;;  %v543_v30 = vmul.f32 0.1, %v525_v21 }
 0x11b   : > { %v544_v28 = vmul.f32 0.1, %v527_v24  ;;  %v531_v29 = vadd.f32 %v530_v27, %v461_v23  ;;  %v665_v23 = vshrl.u32 %v664_v20, 7 }
 0x11c   : > { %v545_v31 = vmul.f32 0.1, %v529_v26  ;;  %v1741_v36 = vmax.f32 %v525_v21, %v543_v30 }
 0x11d   : > { %v546_v32 = vmul.f32 0.1, %v531_v29  ;;  %v1737_v34 = vmax.f32 %v527_v24, %v544_v28  ;;  %v1860_v27 = vsub.s32 0, %v665_v23  ;;  %v1862_v28 = vsub.s32 1, %v665_v23 }
 0x11e   : > { %v1735_v33 = vmax.f32 %v529_v26, %v545_v31  ;;  %v662_v26 = vld [vmem:[%s2055_s11] ss:$8 sm:$0x3] }
 0x11f   : > { %v1739_v35 = vmax.f32 %v531_v29, %v546_v32  ;;  %v1819_v2 = vpop.f32.mrb[4].mxu0  ;;  %v667_v31 = vrot.slane %v662_v26, %v1860_v27  ;;  %v671_v32 = vrot.slane %v662_v26, %v1862_v28 }
 0x120   : > { %v567_v38 = vpack.c.bf16 %v1735_v33, %v1741_v36  ;;  %v1824_v4 = vpop.f32.mrb[5].mxu0 }
 0x121   : > { %v568_v37 = vpack.c.bf16 %v1739_v35, %v1737_v34  ;;  %v1829_v6 = vpop.f32.mrb[6].mxu0 }
 0x122   : > { %v1831_v7 = vpop.f32.mrb[7].mxu0 }
 0x123   : > { %588 = vmatprep.subr.bf16.mxu1 %v568_v37  ;;  %v1326_v37 = vld [vmem:[%s2055_s11 + $0x1] ss:$8 sm:$0x3] }
 0x124   : > { %589 = vmatpush1.bf16.msra.mxu1 %v567_v38 }
 0x127   : > { %1325 = vmatmul.mubr.msk.bf16.vlgmr.msra.gmra.mrb[0].mxu1 %vm584_vm1, %v1410_v39 }
 0x128   : > { %1335 = vmatprep.mubr.msk.bf16.mxu1 %vm584_vm1, %v1412_v60 }
 0x1fa   : > { %v622_v41 = vpop.f32.mrb[0].mxu1 }
 0x1fb   : > { %v623_v43 = vadd.f32 %v622_v41, %v572_v40  ;;  %v624_v44 = vpop.f32.mrb[1].mxu1 }
 0x1fc   : > { %v625_v45 = vadd.f32 %v624_v44, %v572_v40  ;;  %v626_v46 = vpop.f32.mrb[2].mxu1  ;;  %v1327_v44 = vld [vmem:[%s2055_s11 + $0x2] ss:$8 sm:$0x3] }
 0x1fd   : > { %v631_v47 = vmul.f32 0.1, %v623_v43  ;;  %v627_v48 = vadd.f32 %v626_v46, %v577_v42  ;;  %v628_v49 = vpop.f32.mrb[3].mxu1 }
 0x1fe   : > { %v632_v50 = vmul.f32 0.1, %v625_v45  ;;  %v629_v51 = vadd.f32 %v628_v49, %v577_v42  ;;  %v704_v42 = vrot.slane %v1326_v37, %v1860_v27 }
 0x1ff   : > { %v1751_v52 = vmax.f32 %v623_v43, %v631_v47  ;;  %v633_v53 = vmul.f32 0.1, %v627_v48  ;;  %v708_v43 = vrot.slane %v1326_v37, %v1862_v28 }
 0x200   : > { %v1753_v54 = vmax.f32 %v625_v45, %v632_v50  ;;  %v634_v55 = vmul.f32 0.1, %v629_v51 }
 0x201   : > { %v1755_v56 = vmax.f32 %v627_v48, %v633_v53  ;;  %649 = vrot.lane.b32.xlu0 %v1751_v52, %s1520_s29  ;;  %v742_v53 = vrot.slane %v1327_v44, %v1860_v27 }
 0x202   : > { %v1758_v57 = vmax.f32 %v629_v51, %v634_v55  ;;  %797 = vrot.lane.b32.xlu1 %v1753_v54, %s1521_s28  ;;  %v746_v55 = vrot.slane %v1327_v44, %v1862_v28 }
 0x203   : > { %v793_v58 = vpack.c.bf16 %v1755_v56, %v1751_v52 }
 0x204   : > { %v794_v59 = vpack.c.bf16 %v1758_v57, %v1753_v54 }
 0x205   : > { %686 = vrot.lane.b32.xlu0 %v1751_v52, %s1522_s20 }
 0x206   : > { %835 = vrot.lane.b32.xlu1 %v1753_v54, %s1523_s19 }
 0x209   : > { %723 = vrot.lane.b32.xlu0 %v1751_v52, %s1524_s18 }
 0x20a   : > { %873 = vrot.lane.b32.xlu1 %v1753_v54, %s1525_s13 }
 0x20d   : > { %761 = vrot.lane.b32.xlu0 %v1751_v52, %s1526_s23 }
 0x20e   : > { %651 = vrot.lane.b32.xlu1 %v1755_v56, %s1520_s29 }
 0x211   : > { %795 = vrot.lane.b32.xlu0 %v1751_v52, %s1521_s28 }
 0x212   : > { %688 = vrot.lane.b32.xlu1 %v1755_v56, %s1522_s20 }
 0x215   : > { %833 = vrot.lane.b32.xlu0 %v1751_v52, %s1523_s19 }
 0x216   : > { %725 = vrot.lane.b32.xlu1 %v1755_v56, %s1524_s18 }
 0x219   : > { %871 = vrot.lane.b32.xlu0 %v1751_v52, %s1525_s13 }
 0x21a   : > { %763 = vrot.lane.b32.xlu1 %v1755_v56, %s1526_s23 }
 0x21d   : > { %641 = vrot.lane.b32.xlu0 %v1753_v54, %s1520_s29 }
 0x21e   : > { %643 = vrot.lane.b32.xlu1 %v1758_v57, %s1520_s29  ;;  %s1348_s29 = sshll.u32 %s1616_s25, 10 }
 0x221   : > { %680 = vrot.lane.b32.xlu0 %v1753_v54, %s1522_s20 }
 0x222   : > { %682 = vrot.lane.b32.xlu1 %v1758_v57, %s1522_s20 }
 0x225   : > { %717 = vrot.lane.b32.xlu0 %v1753_v54, %s1524_s18 }
 0x226   : > { %719 = vrot.lane.b32.xlu1 %v1758_v57, %s1524_s18 }
 0x229   : > { %755 = vrot.lane.b32.xlu0 %v1753_v54, %s1526_s23 }
 0x22a   : > { %757 = vrot.lane.b32.xlu1 %v1758_v57, %s1526_s23  ;;  %s1225_s23 = scalar_lea.sflag [#allocation4], %s1699_s26 }
 0x22d   : > { %909 = vrot.lane.b32.xlu0 %v1751_v52, %s1527_s27 }
 0x22e   : > { %911 = vrot.lane.b32.xlu1 %v1753_v54, %s1527_s27 }
 0x231   : > { %799 = vrot.lane.b32.xlu0 %v1755_v56, %s1521_s28 }
 0x232   : > { %801 = vrot.lane.b32.xlu1 %v1758_v57, %s1521_s28 }
 0x235   : > { %837 = vrot.lane.b32.xlu0 %v1755_v56, %s1523_s19 }
 0x236   : > { %839 = vrot.lane.b32.xlu1 %v1758_v57, %s1523_s19  ;;  %s1997_s19 = scalar_lea.hbm %s2056_s12, %s1348_s29 }
 0x239   : > { %875 = vrot.lane.b32.xlu0 %v1755_v56, %s1525_s13 }
 0x23a   : > { %877 = vrot.lane.b32.xlu1 %v1758_v57, %s1525_s13  ;;  %s1454_s13 = scalar_lea.vmem %s1453_s14, 2048 }
 0x23d   : > { %913 = vrot.lane.b32.xlu0 %v1755_v56, %s1527_s27 }
 0x23e   : > { %915 = vrot.lane.b32.xlu1 %v1758_v57, %s1527_s27  ;;  %s1982_s27 = scalar_lea.vmem [#allocation5], %s1318_s17 }
 0x23f   : > { %s1238_s17 = sshll.u32 %s1982_s27, 4  ;;  %s1990_s17 = int_to_ptr.vmem [resolvable:$true] %s1238_s17 }
 0x240   : > { %s1448_s25 = scalar_lea.vmem %s1990_s17, 1024  ;;  %p1455_p8 = scmp.lt.s32.totalorder %s1990_s17, %s1453_s14 }
 0x241   : > { %949 = vperm.xlu0 %1407, %v565_v61   ;;  %p1449_p6 = scmp.ne.s32.totalorder %s1990_s17, %s1448_s25  ;;  %p1456_p10 = scmp.lt.s32.totalorder %s1454_s13, %s1448_s25 }
 0x242   : > { %954 = vperm.xlu1 %1408, %v566_v62  }
 0x243   : > { %p1450_p12 = pnand %p1449_p6, %p2069_p11  ;;  %p1457_p0 = por %p1456_p10, %p1455_p8 }
 0x245   : > { %1032 = vperm.xlu0 %1407, %v1028_v63   ;;  %p1451_p13 = pneg %p1450_p12 }
 0x246   : > { %1037 = vperm.xlu1 %1408, %v1029_v1  }
 0x247   : > { %p1458_p2 = pnand %p1457_p0, %p1451_p13 }
 0x249   : > { %465 = vperm.xlu0 %1407, %v451_v3   ;;  %v1328_v3 = vld [vmem:[%s2055_s11 + $0x3] ss:$8 sm:$0x3] }
 0x24a   : > { %470 = vperm.xlu1 %1408, %v452_v5   ;;  %v784_v20 = vrot.slane %v1328_v3, %v1862_v28 }
 0x24d   : > { %1113 = vperm.xlu0 %1407, %v1107_v8  }
 0x24e   : > { %1118 = vperm.xlu1 %1408, %v1108_v9  }
 0x251   : > { %1123 = vperm.xlu0 %1407, %v1109_v10  }
 0x252   : > { %1128 = vperm.xlu1 %1408, %v1110_v11  }
 0x273   : > { %v650_v12 = vpop.permute.xlu0 %649 }
 0x274   : > { %v1845_v13 = vpop.permute.xlu1 %797 }
 0x277   : > { %v687_v14 = vpop.permute.xlu0 %686 }
 0x278   : > { %v1847_v15 = vpop.permute.xlu1 %835 }
 0x27b   : > { %v724_v16 = vpop.permute.xlu0 %723 }
 0x27c   : > { %v1849_v17 = vpop.permute.xlu1 %873 }
 0x27f   : > { %v1851_v18 = vpop.permute.xlu0 %761 }
 0x280   : > { %v652_v19 = vpop.permute.xlu1 %651 }
 0x283   : > { %v1853_v21 = vpop.permute.xlu0 %795 }
 0x284   : > { %v689_v22 = vpop.permute.xlu1 %688 }
 0x287   : > { %v1855_v24 = vpop.permute.xlu0 %833 }
 0x288   : > { %v726_v25 = vpop.permute.xlu1 %725  ;;  %v842_v54 = vsel %vm841_vm6, %v1855_v24, %v1847_v15  ;;  %v850_v57 = vsel %vm841_vm6, %v1847_v15, %v1855_v24  ;;  %v1332_v15 = vld [vmem:[%s2055_s11 + $0x10] ss:$8 sm:$0x3] }
 0x28b   : > { %v1864_v29 = vpop.permute.xlu0 %871 }
 0x28c   : > { %v1866_v30 = vpop.permute.xlu1 %763  ;;  %v888_v24 = vsel %vm879_vm7, %v1849_v17, %v1864_v29 }
 0x28f   : > { %v642_v38 = vpop.permute.xlu0 %641 }
 0x290   : > { %v654_v39 = vsel %vm653_vm2, %v650_v12, %v642_v38  ;;  %v660_v40 = vsel %vm653_vm2, %v642_v38, %v650_v12  ;;  %v644_v41 = vpop.permute.xlu1 %643 }
 0x291   : > { %v674_v45 = vmul.f32 %v667_v31, %v660_v40  ;;  %v675_v46 = vmul.f32 %v671_v32, %v654_v39  ;;  %v655_v47 = vsel %vm653_vm2, %v652_v19, %v644_v41  ;;  %v661_v48 = vsel %vm653_vm2, %v644_v41, %v652_v19 }
 0x292   : > { %v676_v49 = vmul.f32 %v667_v31, %v661_v48  ;;  %v677_v50 = vmul.f32 %v671_v32, %v655_v47 }
 0x293   : > { %v681_v51 = vpop.permute.xlu0 %680 }
 0x294   : > { %v678_v60 = vpack.c.bf16 %v676_v49, %v674_v45  ;;  %v690_v61 = vsel %vm584_vm1, %v687_v14, %v681_v51  ;;  %v696_v62 = vsel %vm584_vm1, %v681_v51, %v687_v14  ;;  %v683_v63 = vpop.permute.xlu1 %682  ;;  %v679_v1 = vpack.c.bf16 %v677_v50, %v675_v46 }
 0x295   : > { %v711_v5 = vmul.f32 %v704_v42, %v696_v62  ;;  %v712_v8 = vmul.f32 %v708_v43, %v690_v61  ;;  %v691_v9 = vsel %vm584_vm1, %v689_v22, %v683_v63  ;;  %v697_v10 = vsel %vm584_vm1, %v683_v63, %v689_v22 }
 0x296   : > { %v713_v11 = vmul.f32 %v704_v42, %v697_v10  ;;  %v714_v12 = vmul.f32 %v708_v43, %v691_v9  ;;  %969 = vmatprep.subr.bf16.mxu1 %v679_v1  ;;  %v780_v14 = vrot.slane %v1328_v3, %v1860_v27  ;;  %v804_v3 = vsel %vm803_vm5, %v1853_v21, %v1845_v13 }
 0x297   : > { %970 = vmatpush1.bf16.msra.mxu1 %v678_v60  ;;  %v718_v19 = vpop.permute.xlu0 %717 }
 0x298   : > { %v715_v23 = vpack.c.bf16 %v713_v11, %v711_v5  ;;  %v728_v26 = vsel %vm727_vm3, %v724_v16, %v718_v19  ;;  %v734_v31 = vsel %vm727_vm3, %v718_v19, %v724_v16  ;;  %v720_v32 = vpop.permute.xlu1 %719  ;;  %v716_v37 = vpack.c.bf16 %v714_v12, %v712_v8 }
 0x299   : > { %v749_v38 = vmul.f32 %v742_v53, %v734_v31  ;;  %v750_v39 = vmul.f32 %v746_v55, %v728_v26  ;;  %v729_v22 = vsel %vm727_vm3, %v726_v25, %v720_v32  ;;  %v735_v40 = vsel %vm727_vm3, %v720_v32, %v726_v25 }
 0x29a   : > { %v751_v41 = vmul.f32 %v742_v53, %v735_v40  ;;  %v752_v42 = vmul.f32 %v746_v55, %v729_v22  ;;  %971 = vmatprep.subr.bf16.mxu1 %v716_v37  ;;  %v1329_v55 = vld [vmem:[%s2055_s11 + $0x5] ss:$8 sm:$0x3]  ;;  %v812_v5 = vsel %vm803_vm5, %v1845_v13, %v1853_v21  ;;  %v1331_v13 = vld [vmem:[%s2055_s11 + $0x7] ss:$8 sm:$0x3] }
 0x29b   : > { %972 = vmatpush1.bf16.msra.mxu1 %v715_v23  ;;  %v756_v43 = vpop.permute.xlu0 %755  ;;  %v820_v63 = vrot.slane %v1329_v55, %v1860_v27  ;;  %v824_v1 = vrot.slane %v1329_v55, %v1862_v28  ;;  %v896_v37 = vrot.slane %v1331_v13, %v1860_v27 }
 0x29c   : > { %v753_v44 = vpack.c.bf16 %v751_v41, %v749_v38  ;;  %v766_v45 = vsel %vm765_vm4, %v1851_v18, %v756_v43  ;;  %v772_v16 = vsel %vm765_vm4, %v756_v43, %v1851_v18  ;;  %v758_v46 = vpop.permute.xlu1 %757  ;;  %v754_v47 = vpack.c.bf16 %v752_v42, %v750_v39 }
 0x29d   : > { %v787_v48 = vmul.f32 %v780_v14, %v772_v16  ;;  %v788_v49 = vmul.f32 %v784_v20, %v766_v45  ;;  %v767_v50 = vsel %vm765_vm4, %v1866_v30, %v758_v46  ;;  %v773_v25 = vsel %vm765_vm4, %v758_v46, %v1866_v30  ;;  %v1330_v30 = vld [vmem:[%s2055_s11 + $0x6] ss:$8 sm:$0x3] }
 0x29e   : > { %v789_v51 = vmul.f32 %v780_v14, %v773_v25  ;;  %v790_v53 = vmul.f32 %v784_v20, %v767_v50  ;;  %973 = vmatprep.subr.bf16.mxu1 %v754_v47  ;;  %v858_v10 = vrot.slane %v1330_v30, %v1860_v27  ;;  %v862_v11 = vrot.slane %v1330_v30, %v1862_v28 }
 0x29f   : > { %974 = vmatpush1.bf16.msra.mxu1 %v753_v44  ;;  %v910_v60 = vpop.permute.xlu0 %909  ;;  %v827_v14 = vmul.f32 %v820_v63, %v804_v3  ;;  %v828_v20 = vmul.f32 %v824_v1, %v812_v5  ;;  %v900_v38 = vrot.slane %v1331_v13, %v1862_v28  ;;  %v934_v16 = vrot.slane %v1332_v15, %v1860_v27 }
 0x2a0   : > { %v791_v18 = vpack.c.bf16 %v789_v51, %v787_v48  ;;  %v912_v61 = vpop.permute.xlu1 %911  ;;  %v792_v62 = vpack.c.bf16 %v790_v53, %v788_v49  ;;  %v865_v40 = vmul.f32 %v858_v10, %v842_v54  ;;  %v866_v41 = vmul.f32 %v862_v11, %v850_v57 }
 0x2a1   : > { %v938_v46 = vrot.slane %v1332_v15, %v1862_v28  ;;  %v904_v50 = vmul.f32 %v900_v38, %v888_v24 }
 0x2a2   : > { %975 = vmatprep.subr.bf16.mxu1 %v792_v62 }
 0x2a3   : > { %976 = vmatpush1.bf16.msra.mxu1 %v791_v18  ;;  %v800_v8 = vpop.permute.xlu0 %799 }
 0x2a4   : > { %v802_v9 = vpop.permute.xlu1 %801  ;;  %977 = vmatprep.subr.bf16.mxu1 %v794_v59 }
 0x2a5   : > { %v805_v12 = vsel %vm803_vm5, %v800_v8, %v802_v9  ;;  %v813_v19 = vsel %vm803_vm5, %v802_v9, %v800_v8 }
 0x2a6   : > { %v829_v21 = vmul.f32 %v820_v63, %v805_v12  ;;  %v830_v23 = vmul.f32 %v824_v1, %v813_v19 }
 0x2a7   : > { %v838_v59 = vpop.permute.xlu0 %837  ;;  %978 = vmatpush1.bf16.msra.mxu1 %v793_v58  ;;  %v880_v58 = vsel %vm879_vm7, %v1864_v29, %v1849_v17  ;;  %v918_v17 = vsel %vm917_vm8, %v910_v60, %v912_v61  ;;  %v926_v29 = vsel %vm917_vm8, %v912_v61, %v910_v60  ;;  %v1414_v60 = vld [vmem:[%s2049_s5] ss:$8 sps:$4 sm:$0xff]  }
 0x2a8   : > { %v831_v26 = vpack.c.bf16 %v829_v21, %v827_v14  ;;  %v840_v31 = vpop.permute.xlu1 %839  ;;  %v832_v32 = vpack.c.bf16 %v830_v23, %v828_v20  ;;  %v903_v49 = vmul.f32 %v896_v37, %v880_v58  ;;  %v941_v63 = vmul.f32 %v934_v16, %v918_v17 }
 0x2a9   : > { %v843_v39 = vsel %vm841_vm6, %v838_v59, %v840_v31  ;;  %v851_v22 = vsel %vm841_vm6, %v840_v31, %v838_v59  ;;  %v942_v1 = vmul.f32 %v938_v46, %v926_v29 }
 0x2aa   : > { %v867_v52 = vmul.f32 %v858_v10, %v843_v39  ;;  %v868_v56 = vmul.f32 %v862_v11, %v851_v22  ;;  %979 = vmatprep.subr.bf16.mxu1 %v832_v32 }
 0x2ab   : > { %v876_v42 = vpop.permute.xlu0 %875  ;;  %980 = vmatpush1.bf16.msra.mxu1 %v831_v26 }
 0x2ac   : > { %v869_v43 = vpack.c.bf16 %v867_v52, %v865_v40  ;;  %v878_v44 = vpop.permute.xlu1 %877  ;;  %v870_v45 = vpack.c.bf16 %v868_v56, %v866_v41 }
 0x2ad   : > { %v881_v47 = vsel %vm879_vm7, %v876_v42, %v878_v44  ;;  %v889_v48 = vsel %vm879_vm7, %v878_v44, %v876_v42 }
 0x2ae   : > { %v905_v25 = vmul.f32 %v896_v37, %v881_v47  ;;  %v906_v51 = vmul.f32 %v900_v38, %v889_v48  ;;  %981 = vmatprep.subr.bf16.mxu1 %v870_v45 }
 0x2af   : > { %v914_v53 = vpop.permute.xlu0 %913  ;;  %982 = vmatpush1.bf16.msra.mxu1 %v869_v43 }
 0x2b0   : > { %v907_v55 = vpack.c.bf16 %v905_v25, %v903_v49  ;;  %v916_v18 = vpop.permute.xlu1 %915  ;;  %v908_v27 = vpack.c.bf16 %v906_v51, %v904_v50  ;;  %v1415_v25 = vld [vmem:[%s2051_s7] sm:$0xff]  }
 0x2b1   : > { %v919_v28 = vsel %vm917_vm8, %v914_v53, %v916_v18  ;;  %v927_v62 = vsel %vm917_vm8, %v916_v18, %v914_v53 }
 0x2b2   : > { %v943_v30 = vmul.f32 %v934_v16, %v919_v28  ;;  %v944_v3 = vmul.f32 %v938_v46, %v927_v62  ;;  %983 = vmatprep.subr.bf16.mxu1 %v908_v27 }
 0x2b3   : > { %984 = vmatpush1.bf16.msra.mxu1 %v907_v55 }
 0x2b4   : > { %v945_v5 = vpack.c.bf16 %v943_v30, %v941_v63  ;;  %v946_v8 = vpack.c.bf16 %v944_v3, %v942_v1 }
 0x2b6   : > { %985 = vmatprep.subr.bf16.mxu1 %v946_v8  ;;  %v1416_v8 = vld [vmem:[%s2053_s9] sm:$0xff]  }
 0x2b7   : > { %986 = vmatpush1.bf16.msra.mxu1 %v945_v5 }
 0x2ba   : > { %1002 = vmatmul.mubr.bf16.vlgmr.msra.gmra.mrb[4].mxu1 %v1414_v60  ;;  %v1417_v60 = vld [vmem:[%s2053_s9 + $0x8] sm:$0xff]  }
 0x2c0   : > { %v950_v61 = vpop.permute.xlu0 %949 }
 0x2c1   : > { %v955_v9 = vpop.permute.xlu1 %954 }
 0x2c4   : > { %v1033_v10 = vpop.permute.xlu0 %1032 }
 0x2c5   : > { %v1038_v11 = vpop.permute.xlu1 %1037 }
 0x2c8   : > { %v466_v12 = vpop.permute.xlu0 %465 }
 0x2c9   : > { %v535_v19 = vadd.f32 %v1819_v2, %v466_v12  ;;  %v537_v14 = vadd.f32 %v1824_v4, %v466_v12  ;;  %v471_v20 = vpop.permute.xlu1 %470 }
 0x2ca   : > { %v539_v13 = vadd.f32 %v1829_v6, %v471_v20  ;;  %v541_v21 = vadd.f32 %v1831_v7, %v471_v20 }
 0x2cb   : > { %v547_v23 = vmul.f32 0.1, %v535_v19  ;;  %v548_v54 = vmul.f32 0.1, %v537_v14 }
 0x2cc   : > { %v549_v57 = vmul.f32 0.1, %v539_v13  ;;  %v550_v59 = vmul.f32 0.1, %v541_v21 }
 0x2cd   : > { %v555_v26 = vmax.f32 %v535_v19, %v547_v23  ;;  %v556_v31 = vmax.f32 %v537_v14, %v548_v54  ;;  %v1119_v12 = vpop.permute.xlu1 %1118 }
 0x2ce   : > { %v557_v32 = vmax.f32 %v539_v13, %v549_v57  ;;  %v558_v37 = vmax.f32 %v541_v21, %v550_v59 }
 0x2d0   : > { %v1105_v38 = vpack.c.bf16 %v557_v32, %v555_v26  ;;  %v1106_v39 = vpack.c.bf16 %v558_v37, %v556_v31 }
 0x38d   : > { %v1003_v22 = vpop.f32.mrb[4].mxu1 }
 0x38e   : > { %v1004_v40 = vadd.f32 %v1003_v22, %v950_v61  ;;  %v1005_v2 = vpop.f32.mrb[5].mxu1 }
 0x38f   : > { %v1006_v41 = vadd.f32 %v1005_v2, %v950_v61  ;;  %v1007_v4 = vpop.f32.mrb[6].mxu1  ;;  %v1114_v61 = vpop.permute.xlu0 %1113 }
 0x390   : > { %v1012_v15 = vmul.f32 0.1, %v1004_v40  ;;  %v1008_v52 = vadd.f32 %v1007_v4, %v955_v9  ;;  %v1009_v6 = vpop.f32.mrb[7].mxu1 }
 0x391   : > { %v1013_v56 = vmul.f32 0.1, %v1006_v41  ;;  %v1010_v7 = vadd.f32 %v1009_v6, %v955_v9 }
 0x392   : > { %v1016_v58 = vmax.f32 %v1004_v40, %v1012_v15  ;;  %v1014_v24 = vmul.f32 0.1, %v1008_v52  ;;  %v1129_v40 = vpop.permute.xlu1 %1128 }
 0x393   : > { %v1017_v42 = vmax.f32 %v1006_v41, %v1013_v56  ;;  %v1015_v43 = vmul.f32 0.1, %v1010_v7  ;;  %v1124_v32 = vpop.permute.xlu0 %1123 }
 0x394   : > { %v1018_v44 = vmax.f32 %v1008_v52, %v1014_v24  ;;  %v1020_v16 = vadd.f32 %v1016_v58, %v1741_v36 }
 0x395   : > { %v1019_v45 = vmax.f32 %v1010_v7, %v1015_v43  ;;  %v1021_v47 = vadd.f32 %v1017_v42, %v1737_v34 }
 0x396   : > { %v1022_v46 = vadd.f32 %v1018_v44, %v1735_v33 }
 0x397   : > { %v1023_v48 = vadd.f32 %v1019_v45, %v1739_v35 }
 0x398   : > { %v1026_v49 = vpack.c.bf16 %v1022_v46, %v1020_v16 }
 0x399   : > { %v1027_v50 = vpack.c.bf16 %v1023_v48, %v1021_v47 }
 0x39b   : > { %1048 = vmatprep.subr.bf16.mxu0 %v1027_v50 }
 0x39c   : > { %1049 = vmatpush1.bf16.msra.mxu0 %v1026_v49 }
 0x39f   : > { %1337 = vmatmul.mubr.msk.bf16.vlgmr.msra.gmra.mrb[8].mxu0 %vm584_vm1, %v1415_v25 }
 0x3a0   : > { %1179 = vmatprep.mubr.bf16.mxu0 %v1519_v0 }
 0x472   : > { %v1082_v51 = vpop.f32.mrb[8].mxu0 }
 0x473   : > { %v1083_v36 = vadd.f32 %v1082_v51, %v1033_v10  ;;  %v1084_v17 = vpop.f32.mrb[9].mxu0 }
 0x474   : > { %v1085_v33 = vadd.f32 %v1084_v17, %v1033_v10  ;;  %v1086_v29 = vpop.f32.mrb[10].mxu0 }
 0x475   : > { %v1091_v34 = vmul.f32 0.1, %v1083_v36  ;;  %v1087_v53 = vadd.f32 %v1086_v29, %v1038_v11  ;;  %v1088_v35 = vpop.f32.mrb[11].mxu0 }
 0x476   : > { %v1092_v55 = vmul.f32 0.1, %v1085_v33  ;;  %v1089_v18 = vadd.f32 %v1088_v35, %v1038_v11 }
 0x477   : > { %v1093_v27 = vmul.f32 0.1, %v1087_v53  ;;  %v1095_v62 = vmax.f32 %v1083_v36, %v1091_v34 }
 0x478   : > { %v1094_v28 = vmul.f32 0.1, %v1089_v18  ;;  %v1096_v1 = vmax.f32 %v1085_v33, %v1092_v55 }
 0x479   : > { %v1097_v63 = vmax.f32 %v1087_v53, %v1093_v27 }
 0x47a   : > { %v1098_v30 = vmax.f32 %v1089_v18, %v1094_v28 }
 0x47b   : > { %v1103_v3 = vpack.c.bf16 %v1097_v63, %v1095_v62 }
 0x47c   : > { %v1104_v5 = vpack.c.bf16 %v1098_v30, %v1096_v1 }
 0x47e   : > { %1147 = vmatprep.subr.bf16.mxu0 %v1104_v5 }
 0x47f   : > { %1148 = vmatpush1.bf16.msra.mxu0 %v1103_v3 }
 0x480   : > { %1149 = vmatprep.subr.bf16.mxu0 %v1106_v39 }
 0x483   : > { %1150 = vmatpush1.bf16.msra.mxu0 %v1105_v38 }
 0x486   : > { %1340 = vmatmul.mubr.msk.bf16.vlgmr.msra.gmra.mrb[12].mxu0 %vm483_vm0, %v1416_v8 }
 0x487   : > { %1189 = vmatprep.mubr.bf16.mxu0 %v1519_v0 }
 0x48e   : > { %1341 = vmatmul.mubr.msk.bf16.gmra.mrb[16].mxu0 %vm483_vm0, %v1417_v60 }
 0x559   : > { %v1181_v9 = vpop.f32.mrb[12].mxu0 }
 0x55a   : > { %v1182_v10 = vadd.f32 %v1181_v9, %v1114_v61  ;;  %v1183_v11 = vpop.f32.mrb[13].mxu0 }
 0x55b   : > { %v1184_v19 = vadd.f32 %v1183_v11, %v1114_v61  ;;  %v1185_v14 = vpop.f32.mrb[14].mxu0 }
 0x55c   : > { %v1200_v20 = vmul.f32 0.1, %v1182_v10  ;;  %v1186_v13 = vadd.f32 %v1185_v14, %v1119_v12  ;;  %v1187_v21 = vpop.f32.mrb[15].mxu0 }
 0x55d   : > { %v1201_v23 = vmul.f32 0.1, %v1184_v19  ;;  %v1188_v54 = vadd.f32 %v1187_v21, %v1119_v12 }
 0x55e   : > { %v1208_v0 = vmax.f32 %v1182_v10, %v1200_v20  ;;  %v1202_v57 = vmul.f32 0.1, %v1186_v13 }
 0x55f   : > { %v1209_v59 = vmax.f32 %v1184_v19, %v1201_v23  ;;  %v1203_v26 = vmul.f32 0.1, %v1188_v54 }
 0x560   : > { %1216 = vst [vmem:[%s1982_s27] sm:$0xff] %v1208_v0  ;;  %v1210_v31 = vmax.f32 %v1186_v13, %v1202_v57 }
 0x561   : > { %1217 = vst [vmem:[%s1982_s27 + $0x8] sm:$0xff] %v1209_v59  ;;  %v1211_v37 = vmax.f32 %v1188_v54, %v1203_v26  ;;  %v1191_v38 = vpop.f32.mrb[16].mxu0 }
 0x562   : > { %1218 = vst [vmem:[%s1982_s27 + $0x10] sm:$0xff] %v1210_v31  ;;  %v1192_v39 = vadd.f32 %v1191_v38, %v1124_v32  ;;  %v1193_v22 = vpop.f32.mrb[17].mxu0 }
 0x563   : > { %1219 = vst [vmem:[%s1982_s27 + $0x18] sm:$0xff] %v1211_v37  ;;  %v1194_v2 = vadd.f32 %v1193_v22, %v1124_v32  ;;  %v1195_v41 = vpop.f32.mrb[18].mxu0 }
 0x564   : > { %v1204_v4 = vmul.f32 0.1, %v1192_v39  ;;  %v1196_v15 = vadd.f32 %v1195_v41, %v1129_v40  ;;  %v1197_v52 = vpop.f32.mrb[19].mxu0 }
 0x565   : > { %v1205_v6 = vmul.f32 0.1, %v1194_v2  ;;  %v1198_v56 = vadd.f32 %v1197_v52, %v1129_v40 }
 0x566   : > { %v1212_v7 = vmax.f32 %v1192_v39, %v1204_v4  ;;  %v1206_v58 = vmul.f32 0.1, %v1196_v15 }
 0x567   : > { %v1213_v24 = vmax.f32 %v1194_v2, %v1205_v6  ;;  %v1207_v42 = vmul.f32 0.1, %v1198_v56 }
 0x568   : > { %1220 = vst [vmem:[%s1982_s27 + $0x20] sm:$0xff] %v1212_v7  ;;  %v1214_v43 = vmax.f32 %v1196_v15, %v1206_v58 }
 0x569   : > { %1221 = vst [vmem:[%s1982_s27 + $0x28] sm:$0xff] %v1213_v24  ;;  %v1215_v44 = vmax.f32 %v1198_v56, %v1207_v42 }
 0x56a   : > { %1222 = vst [vmem:[%s1982_s27 + $0x30] sm:$0xff] %v1214_v43 }
 0x56b   : > { %1223 = vst [vmem:[%s1982_s27 + $0x38] sm:$0xff] %v1215_v44 }
 0x56c   : > { %1461 = shalt.err (!%p1458_p2)
}
 0x56d   : > { %s1462_s27 = scalar_lea.hbm %s1997_s19, 1024  ;;  %s1466_s18 = scalar_lea.hbm %s2056_s12, 2048 }
 0x56e   : > { %p1463_p4 = scmp.ne.s32.totalorder %s1997_s19, %s1462_s27  ;;  %p1467_p9 = scmp.lt.u32.totalorder %s1997_s19, %s2056_s12 }
 0x56f   : > { %p1468_p1 = scmp.lt.u32.totalorder %s1466_s18, %s1462_s27  ;;  %p1470_p6 = scmp.lt.u32.totalorder %s1462_s27, %s1997_s19 }
 0x570   : > { %p1464_p5 = pnand %p1463_p4, %p2069_p11 }
 0x571   : > { %p1469_p3 = por %p1468_p1, %p1467_p9 }
 0x572   : > { %p1465_p7 = pneg %p1464_p5 }
 0x573   : > { %p1471_p12 = por %p1470_p6, %p1469_p3 }
 0x575   : > { %p1472_p13 = pnand %p1471_p12, %p1465_p7 }
 0x577   : > { %1475 = shalt.err (!%p1472_p13)
}
 0x578   : > { %s1529_s25 = smov 256  }
 0x579   : > { %1351 = dma.vmem_to_hbm [thread:$0]  (%p2069_p11), %s1990_s17, 1024, %s1997_s19, %s1225_s23, %s1529_s25, %s1529_s25, %s1522_s20  }
 0x57a PF: > { %s1253_s13 = sand.u32 1, %s1502_s21   ;;  %p2070_p8 = scmp.ne.s32.totalorder %s2067_s16, 0 }
 0x57b   : > { %p2071_p10 = scmp.ge.s32.totalorder %s1514_s24, 2  ;;  %s1254_s27 = scalar_lea.sflag [#allocation4], %s1253_s13 }
 0x57d   : > { %p1358_p0 = pnand %p2071_p10, %p2070_p8 }
 0x57f   : > { %1497 = dma.done.wait (!%p1358_p0), %s1254_s27, 1024  }
 0x580   : > { %1499 = vsyncadd (!%p1358_p0), %s1254_s27, 4294966272  ;;  %s2072_s24 = sld [smem:[#allocation9_spill]]  ;;  %s2073_s15 = sld [smem:[#allocation8_spill]] }
 0x581   : > { %s2074_s23 = sld [smem:[#allocation10_spill]]  ;;  %s2075_s21 = smov %s1506_s22 }
 0x586   : > { %p25_p2 = scmp.ge.s32.totalorder %s2072_s24, 4   ;;  %s2076_s22 = smov %s2073_s15 }
 0x588   :  { %27 = sbr.rel (!%p25_p2) target bundleno = 5 (0x5), region = 120 }
 0x58f   :  { %1259 = vsyncpa [#allocation3], 1 }
 0x590   :  { %1261 = vsyncpa [#allocation3 + $0x1], 1 }
 0x591   :  { %1262 = vsyncpa [#allocation4], 1 }
 0x592   :  { %1264 = vsyncpa [#allocation4 + $0x1], 1 }

</bundles_post_ra>
